<compile_context>
chip_gen: v7x
topology: tpu7x:2x2x1
jax: 0.10.0
libtpu: 0.0.40
codegen_flags: <defaults>
</compile_context>

<pallas_src>
import math

import jax
import jax.numpy as jnp
from jax.experimental import pallas as pl
from jax.experimental.pallas import tpu as pltpu

# Sublane alignment safe for both f32 (8,128) and bf16 (16,128) tiles.
_SUBLANE_ALIGN = 16
# Tables with up to this many rows are kept resident in VMEM and gathered
# in-kernel via a one-hot MXU matmul; beyond that the one-hot cost stops
# paying for itself and we fall back to the streaming (XLA-gather) path.
_FUSED_MAX_ROWS = 512


def _round_up(x, m):
    return ((x + m - 1) // m) * m


def _effective_tile(batch, tb):
    """Batch tile: sublane-aligned, <= padded batch, and small enough that the
    grid keeps at least ~4 steps (pipelining; leaves work to shard on v7x)."""
    b_al = _round_up(max(int(batch), 1), _SUBLANE_ALIGN)
    tb_al = _round_up(max(int(tb), 1), _SUBLANE_ALIGN)
    cap = _round_up(-(-b_al // 4), _SUBLANE_ALIGN)  # ceil(b/4), aligned
    return max(_SUBLANE_ALIGN, min(tb_al, b_al, cap))


# ---------------------------------------------------------------------------
# Streaming path: pre-gathered (B, D) embeddings in, (B,) scores out.
# ---------------------------------------------------------------------------

def _transe_stream_kernel(h_ref, r_ref, t_ref, o_ref):
    # h/r/t: (tb, D) tiles (f32 or bf16); o: (tb, 1) f32 scores.
    h = h_ref[...].astype(jnp.float32)
    r = r_ref[...].astype(jnp.float32)
    t = t_ref[...].astype(jnp.float32)
    d = h + r - t
    o_ref[...] = jnp.sqrt(jnp.sum(d * d, axis=1, keepdims=True))


def transe_score(head_emb, rel_emb, tail_emb, *, tb=2048,
                 vmem_limit_bytes=None, allow_input_fusion=False):
    """L2 norm of (head_emb + rel_emb - tail_emb) along axis=1.

    head_emb, rel_emb, tail_emb: [B, D] float32 or bfloat16.  Returns [B] f32.
    tb=2048 targets v5e/v6e; use ~4096 on v7x (and raise vmem_limit_bytes on
    v5e if you do the same there with f32 inputs).
    """
    B, D = head_emb.shape
    tb_eff = _effective_tile(B, tb)
    B_pad = _round_up(B, tb_eff)
    if B_pad != B:
        pad = ((0, B_pad - B), (0, 0))
        head_emb = jnp.pad(head_emb, pad)
        rel_emb = jnp.pad(rel_emb, pad)
        tail_emb = jnp.pad(tail_emb, pad)
    grid = (B_pad // tb_eff,)

    emb_spec = pl.BlockSpec((tb_eff, D), lambda i: (i, 0))
    out_spec = pl.BlockSpec((tb_eff, 1), lambda i: (i, 0))

    itemsize = jnp.dtype(head_emb.dtype).itemsize
    cost = pl.CostEstimate(
        flops=5 * B_pad * D,
        transcendentals=B_pad,
        bytes_accessed=3 * B_pad * D * itemsize + 4 * B_pad,
    )

    out = pl.pallas_call(
        _transe_stream_kernel,
        out_shape=jax.ShapeDtypeStruct((B_pad, 1), jnp.float32),
        grid_spec=pltpu.PrefetchScalarGridSpec(
            num_scalar_prefetch=0,
            grid=grid,
            in_specs=[emb_spec, emb_spec, emb_spec],
            out_specs=out_spec,
        ),
        compiler_params=pltpu.CompilerParams(
            dimension_semantics=("parallel",),
            vmem_limit_bytes=vmem_limit_bytes,
            allow_input_fusion=[True, True, True] if allow_input_fusion else None,
        ),
        cost_estimate=cost,
    )(head_emb, rel_emb, tail_emb)
    return out[:B, 0]


# ---------------------------------------------------------------------------
# Fused path: indices + whole tables in, (B,) scores out (gather in-kernel).
# ---------------------------------------------------------------------------

def _transe_fused_kernel(h_idx_ref, r_idx_ref, t_idx_ref, ent_ref, rel_ref, o_ref):
    # h/r/t_idx: (tb, 1) int32; ent: (Ne, D); rel: (Nr, D); o: (tb, 1) f32.
    tb = h_idx_ref.shape[0]
    ne = ent_ref.shape[0]
    nr = rel_ref.shape[0]
    ent = ent_ref[...].astype(jnp.float32)
    rel = rel_ref[...].astype(jnp.float32)

    def gather(idx_col, table, n):
        # One-hot row select on the MXU: (tb, n) @ (n, D) -> (tb, D).
        onehot = (idx_col == jax.lax.broadcasted_iota(jnp.int32, (tb, n), 1))
        return jnp.dot(onehot.astype(jnp.float32), table,
                       preferred_element_type=jnp.float32)

    h = gather(h_idx_ref[...], ent, ne)
    t = gather(t_idx_ref[...], ent, ne)
    r = gather(r_idx_ref[...], rel, nr)
    d = h + r - t
    o_ref[...] = jnp.sqrt(jnp.sum(d * d, axis=1, keepdims=True))


def transe_score_fused(head_idx, rel_idx, tail_idx, entity_table, relation_table,
                       *, tb=2048, vmem_limit_bytes=None):
    """Fused gather + TransE score for small embedding tables (VMEM-resident)."""
    B = head_idx.shape[0]
    Ne, D = entity_table.shape
    Nr, _ = relation_table.shape
    tb_eff = _effective_tile(B, tb)
    B_pad = _round_up(B, tb_eff)

    def prep(idx):
        idx = jnp.asarray(idx, jnp.int32)
        if B_pad != B:
            idx = jnp.pad(idx, (0, B_pad - B))  # row 0 is always a valid index
        return idx.reshape(B_pad, 1)

    h_idx, r_idx, t_idx = prep(head_idx), prep(rel_idx), prep(tail_idx)
    grid = (B_pad // tb_eff,)

    idx_spec = pl.BlockSpec((tb_eff, 1), lambda i: (i, 0))
    ent_spec = pl.BlockSpec((Ne, D), lambda i: (0, 0))  # constant -> resident
    rel_spec = pl.BlockSpec((Nr, D), lambda i: (0, 0))
    out_spec = pl.BlockSpec((tb_eff, 1), lambda i: (i, 0))

    itemsize = jnp.dtype(entity_table.dtype).itemsize
    cost = pl.CostEstimate(
        flops=2 * B_pad * D * (2 * Ne + Nr) + 5 * B_pad * D,
        transcendentals=B_pad,
        bytes_accessed=(Ne + Nr) * D * itemsize + 3 * 4 * B_pad + 4 * B_pad,
    )

    out = pl.pallas_call(
        _transe_fused_kernel,
        out_shape=jax.ShapeDtypeStruct((B_pad, 1), jnp.float32),
        grid_spec=pltpu.PrefetchScalarGridSpec(
            num_scalar_prefetch=0,
            grid=grid,
            in_specs=[idx_spec, idx_spec, idx_spec, ent_spec, rel_spec],
            out_specs=out_spec,
        ),
        compiler_params=pltpu.CompilerParams(
            dimension_semantics=("parallel",),
            vmem_limit_bytes=vmem_limit_bytes,
        ),
        cost_estimate=cost,
    )(h_idx, r_idx, t_idx, entity_table, relation_table)
    return out[:B, 0]


# ---------------------------------------------------------------------------
# Module wrapper mirroring the PyTorch TransE.
# ---------------------------------------------------------------------------

def xavier_uniform(key, shape):
    fan_in, fan_out = shape[0], shape[1]
    a = math.sqrt(6.0 / (fan_in + fan_out))
    return jax.random.uniform(key, shape, dtype=jnp.float32, minval=-a, maxval=a)


class TransEPallas:
    def __init__(self, num_entities, num_relations, embedding_dim, margin=1.0,
                 key=None, dtype=jnp.float32, batch_tile=2048, vmem_limit_bytes=None):
        if key is None:
            key = jax.random.PRNGKey(0)
        k_e, k_r = jax.random.split(key)
        # dtype=jnp.bfloat16 halves HBM traffic of this memory-bound op; the
        # kernels upcast to f32 before the math.
        self.entity_embeddings = xavier_uniform(k_e, (num_entities, embedding_dim)).astype(dtype)
        self.relation_embeddings = xavier_uniform(k_r, (num_relations, embedding_dim)).astype(dtype)
        self.margin = margin
        self.batch_tile = batch_tile
        self.vmem_limit_bytes = vmem_limit_bytes

    def forward(self, head, relation, tail, mode="positive"):
        # 'positive' and 'negative' modes share identical math in the reference.
        head = jnp.asarray(head, jnp.int32)
        relation = jnp.asarray(relation, jnp.int32)
        tail = jnp.asarray(tail, jnp.int32)
        B = head.shape[0]

        num_entities = self.entity_embeddings.shape[0]
        num_relations = self.relation_embeddings.shape[0]
        if num_entities <= _FUSED_MAX_ROWS and num_relations <= _FUSED_MAX_ROWS:
            # Fused gather + score: tables stay resident in VMEM, indices stream.
            return transe_score_fused(
                head, relation, tail,
                self.entity_embeddings, self.relation_embeddings,
                tb=self.batch_tile, vmem_limit_bytes=self.vmem_limit_bytes)

        # Streaming fallback for large tables: pad the *indices* (not the
        # gathered embeddings) so padded rows cost only the gather of row 0.
        tb_eff = _effective_tile(B, self.batch_tile)
        B_pad = _round_up(B, tb_eff)
        if B_pad != B:
            pad = (0, B_pad - B)
            head = jnp.pad(head, pad)
            relation = jnp.pad(relation, pad)
            tail = jnp.pad(tail, pad)
        head_emb = jnp.take(self.entity_embeddings, head, axis=0)
        relation_emb = jnp.take(self.relation_embeddings, relation, axis=0)
        tail_emb = jnp.take(self.entity_embeddings, tail, axis=0)
        scores = transe_score(head_emb, relation_emb, tail_emb,
                              tb=tb_eff, vmem_limit_bytes=self.vmem_limit_bytes)
        return scores[:B]

    def get_embeddings(self):
        return (jnp.asarray(self.entity_embeddings), jnp.asarray(self.relation_embeddings))


if __name__ == "__main__":
    num_entities = 64
    num_relations = 16
    embedding_dim = 128
    batch = 20  # deliberately not tile-aligned to exercise the padding path

    key = jax.random.PRNGKey(0)
    k_model, k_h, k_r, k_t = jax.random.split(key, 4)

    head = jax.random.randint(k_h, (batch,), 0, num_entities, dtype=jnp.int32)
    relation = jax.random.randint(k_r, (batch,), 0, num_relations, dtype=jnp.int32)
    tail = jax.random.randint(k_t, (batch,), 0, num_entities, dtype=jnp.int32)

    # --- f32 model, fused (gather-in-kernel) path ----------------------------
    model = TransEPallas(num_entities, num_relations, embedding_dim, margin=1.0, key=k_model)
    score = jax.block_until_ready(model.forward(head, relation, tail, mode="positive"))

    he = model.entity_embeddings[head]
    re = model.relation_embeddings[relation]
    te = model.entity_embeddings[tail]
    ref = jnp.linalg.norm(he + re - te, ord=2, axis=1)
    assert score.shape == (batch,)
    assert jnp.allclose(score, ref, atol=1e-4, rtol=1e-4), float(jnp.max(jnp.abs(score - ref)))

    # --- f32 streaming path (pre-gathered embeddings) ------------------------
    score_stream = jax.block_until_ready(transe_score(he, re, te, tb=2048))
    assert score_stream.shape == (batch,)
    assert jnp.allclose(score_stream, ref, atol=1e-4, rtol=1e-4)

    # --- bf16 embedding tables (half the HBM traffic); kernel math stays f32 -
    model_bf16 = TransEPallas(num_entities, num_relations, embedding_dim,
                              margin=1.0, key=k_model, dtype=jnp.bfloat16)
    score_bf16 = jax.block_until_ready(model_bf16.forward(head, relation, tail))
    he16 = model_bf16.entity_embeddings[head].astype(jnp.float32)
    re16 = model_bf16.relation_embeddings[relation].astype(jnp.float32)
    te16 = model_bf16.entity_embeddings[tail].astype(jnp.float32)
    ref16 = jnp.linalg.norm(he16 + re16 - te16, ord=2, axis=1)
    assert score_bf16.shape == (batch,)
    assert jnp.allclose(score_bf16, ref16, atol=1e-3, rtol=1e-3)

    print("KERNEL_OK")
</pallas_src>

<mosaic_0001>
module attributes {stable_mosaic.version = 11 : i64} {
  func.func @_transe_fused_kernel(%arg0: i32, %arg1: memref<16x1xi32, #tpu.memory_space<vmem>>, %arg2: memref<16x1xi32, #tpu.memory_space<vmem>>, %arg3: memref<16x1xi32, #tpu.memory_space<vmem>>, %arg4: memref<64x128xf32, #tpu.memory_space<vmem>>, %arg5: memref<16x128xf32, #tpu.memory_space<vmem>>, %arg6: memref<16x1xf32, #tpu.memory_space<vmem>>) attributes {dimension_semantics = [#tpu.dimension_semantics<parallel>], iteration_bounds = array<i64: 2>, scalar_prefetch = 0 : i64, scratch_operands = 0 : i64, tpu.core_type = #tpu.core_type<tc>, window_params = [{transform_indices = @transform_0, window_bounds = array<i64: 16, 1>}, {transform_indices = @transform_1, window_bounds = array<i64: 16, 1>}, {transform_indices = @transform_2, window_bounds = array<i64: 16, 1>}, {pipeline_mode = #tpu.pipeline_mode<synchronous>, transform_indices = @transform_3, window_bounds = array<i64: 64, 128>}, {pipeline_mode = #tpu.pipeline_mode<synchronous>, transform_indices = @transform_4, window_bounds = array<i64: 16, 128>}, {transform_indices = @transform_5, window_bounds = array<i64: 16, 1>}]} {
    %c0 = arith.constant 0 : index
    %c0_0 = arith.constant 0 : index
    %0 = vector.load %arg4[%c0, %c0_0] : memref<64x128xf32, #tpu.memory_space<vmem>>, vector<64x128xf32>
    %c0_1 = arith.constant 0 : index
    %c0_2 = arith.constant 0 : index
    %1 = vector.load %arg5[%c0_1, %c0_2] : memref<16x128xf32, #tpu.memory_space<vmem>>, vector<16x128xf32>
    %c0_3 = arith.constant 0 : index
    %c0_4 = arith.constant 0 : index
    %2 = vector.load %arg1[%c0_3, %c0_4] : memref<16x1xi32, #tpu.memory_space<vmem>>, vector<16x1xi32>
    %3 = tpu.iota {dimensions = array<i32: 1>} : vector<16x64xi32>
    %4 = vector.broadcast %2 : vector<16x1xi32> to vector<16x64xi32>
    %5 = arith.cmpi eq, %4, %3 : vector<16x64xi32>
    %6 = arith.extui %5 : vector<16x64xi1> to vector<16x64xi32>
    %7 = arith.sitofp %6 : vector<16x64xi32> to vector<16x64xf32>
    %cst = arith.constant dense<0.000000e+00> : vector<16x128xf32>
    %8 = tpu.matmul %7, %0, %cst {dimension_numbers = #tpu.dot_dimension_numbers<[1], [0], [0], [1], [0, 0, 1, 1], [], []>} : vector<16x64xf32>, vector<64x128xf32>, vector<16x128xf32> -> vector<16x128xf32>
    %c0_5 = arith.constant 0 : index
    %c0_6 = arith.constant 0 : index
    %9 = vector.load %arg3[%c0_5, %c0_6] : memref<16x1xi32, #tpu.memory_space<vmem>>, vector<16x1xi32>
    %10 = tpu.iota {dimensions = array<i32: 1>} : vector<16x64xi32>
    %11 = vector.broadcast %9 : vector<16x1xi32> to vector<16x64xi32>
    %12 = arith.cmpi eq, %11, %10 : vector<16x64xi32>
    %13 = arith.extui %12 : vector<16x64xi1> to vector<16x64xi32>
    %14 = arith.sitofp %13 : vector<16x64xi32> to vector<16x64xf32>
    %cst_7 = arith.constant dense<0.000000e+00> : vector<16x128xf32>
    %15 = tpu.matmul %14, %0, %cst_7 {dimension_numbers = #tpu.dot_dimension_numbers<[1], [0], [0], [1], [0, 0, 1, 1], [], []>} : vector<16x64xf32>, vector<64x128xf32>, vector<16x128xf32> -> vector<16x128xf32>
    %c0_8 = arith.constant 0 : index
    %c0_9 = arith.constant 0 : index
    %16 = vector.load %arg2[%c0_8, %c0_9] : memref<16x1xi32, #tpu.memory_space<vmem>>, vector<16x1xi32>
    %17 = tpu.iota {dimensions = array<i32: 1>} : vector<16x16xi32>
    %18 = vector.broadcast %16 : vector<16x1xi32> to vector<16x16xi32>
    %19 = arith.cmpi eq, %18, %17 : vector<16x16xi32>
    %20 = arith.extui %19 : vector<16x16xi1> to vector<16x16xi32>
    %21 = arith.sitofp %20 : vector<16x16xi32> to vector<16x16xf32>
    %cst_10 = arith.constant dense<0.000000e+00> : vector<16x128xf32>
    %22 = tpu.matmul %21, %1, %cst_10 {dimension_numbers = #tpu.dot_dimension_numbers<[1], [0], [0], [1], [0, 0, 1, 1], [], []>} : vector<16x16xf32>, vector<16x128xf32>, vector<16x128xf32> -> vector<16x128xf32>
    %23 = arith.addf %8, %22 : vector<16x128xf32>
    %24 = arith.subf %23, %15 : vector<16x128xf32>
    %25 = arith.mulf %24, %24 : vector<16x128xf32>
    %cst_11 = arith.constant dense<0.000000e+00> : vector<16xf32>
    %26 = vector.multi_reduction <add>, %25, %cst_11 [1] : vector<16x128xf32> to vector<16xf32>
    %27 = vector.shape_cast %26 : vector<16xf32> to vector<16x1xf32>
    %28 = math.sqrt %27 : vector<16x1xf32>
    %c0_12 = arith.constant 0 : index
    %c0_13 = arith.constant 0 : index
    %29 = vector.load %arg6[%c0_12, %c0_13] : memref<16x1xf32, #tpu.memory_space<vmem>>, vector<16x1xf32>
    tpu.vector_store %arg6[%c0_12, %c0_13], %28 {strides = array<i32>} : memref<16x1xf32, #tpu.memory_space<vmem>>, vector<16x1xf32>,
    return
  }
  func.func @transform_0(%arg0: i32) -> (i32, i32) {
    %c0_i32 = arith.constant 0 : i32
    %c0_i32_0 = arith.constant 0 : i32
    return %arg0, %c0_i32 : i32, i32
  }
  func.func @transform_1(%arg0: i32) -> (i32, i32) {
    %c0_i32 = arith.constant 0 : i32
    %c0_i32_0 = arith.constant 0 : i32
    return %arg0, %c0_i32 : i32, i32
  }
  func.func @transform_2(%arg0: i32) -> (i32, i32) {
    %c0_i32 = arith.constant 0 : i32
    %c0_i32_0 = arith.constant 0 : i32
    return %arg0, %c0_i32 : i32, i32
  }
  func.func @transform_3(%arg0: i32) -> (i32, i32) {
    %c0_i32 = arith.constant 0 : i32
    %c0_i32_0 = arith.constant 0 : i32
    %c0_i32_1 = arith.constant 0 : i32
    return %c0_i32, %c0_i32_0 : i32, i32
  }
  func.func @transform_4(%arg0: i32) -> (i32, i32) {
    %c0_i32 = arith.constant 0 : i32
    %c0_i32_0 = arith.constant 0 : i32
    %c0_i32_1 = arith.constant 0 : i32
    return %c0_i32, %c0_i32_0 : i32, i32
  }
  func.func @transform_5(%arg0: i32) -> (i32, i32) {
    %c0_i32 = arith.constant 0 : i32
    %c0_i32_0 = arith.constant 0 : i32
    return %arg0, %c0_i32 : i32, i32
  }
}

</mosaic_0001>

<bundles_post_ra>
// kernel: tpu_custom_call.1
= control target key start
LH: loop header
LB: loop body
LE: loop exit
PB: predicated region body
PF: predicated region fallthrough
CT: control target
= control target key end

     0   :  { %s866_s18 = smov 0   ;;  %s929_s0 = inlined_call_operand.vmem [shape: s32[32,1], index: 0, kind: input, shape index: {}]   ;;  %s930_s1 = inlined_call_operand.vmem [shape: s32[32,1], index: 1, kind: input, shape index: {}]   ;;  %s931_s2 = inlined_call_operand.vmem [shape: s32[32,1], index: 2, kind: input, shape index: {}]   ;;  %s932_s3 = inlined_call_operand.vmem [shape: f32[64,128], index: 3, kind: input, shape index: {}]   ;;  %s933_s4 = inlined_call_operand.vmem [shape: f32[16,128], index: 4, kind: input, shape index: {}]   ;;  %s934_s5 = inlined_call_operand.vmem [shape: f32[32,1], index: 5, kind: output, shape index: {}]  }
   0x1 LB: > { %s676_s19 = sadd.s32 4294967295, %s832_s18   ;;  %p680_p0 = scmp.ge.s32.totalorder %s832_s18, 1  ;;  %s832_s18 = sphi %s866_s18, %s15_s18  }
   0x2   : > { %p210_p1 = scmp.lt.s32.totalorder %s832_s18, 3 }
   0x4   : > { %p211_p2 = pnand %p680_p0, %p210_p1 }
   0x5   : > { %s681_s20 = sshll.u32 (!%p211_p2), %s676_s19, 1  ;;  %v272_v0 = vld [vmem:[%s932_s3] sm:$0xff] (!%p211_p2)  ;;  %v273_v1 = vld [vmem:[%s932_s3 + $0x8] sm:$0xff] (!%p211_p2)  ;;  %v834_v2 = vmov (!%p211_p2), 0   ;;  %v274_v4 = vld [vmem:[%s932_s3 + $0x10] sm:$0xff] (!%p211_p2)  ;;  %v284_v22 = vlaneseq (!%p211_p2)  ;;  %vm408_vm0 = vcmask (!%p211_p2), 130048  }
   0x6   : > { %214 = sbr.rel (%p211_p2) target bundleno = 542 (0x21e), region = 40  ;;  %820 = vset.pattern.permute.xlu0 (!%p211_p2), %v834_v2  ;;  %p249_p3 = scmp.lt.s32.totalorder (!%p211_p2), %s681_s20, 3  ;;  %821 = vset.pattern.permute.xlu1 (!%p211_p2), %v834_v2  ;;  %v772_v3 = vpack.c.bf16 (!%p211_p2), %v273_v1, %v272_v0  ;;  %v275_v5 = vld [vmem:[%s932_s3 + $0x18] sm:$0xff] (!%p211_p2)  ;;  %v280_v7 = vld [vmem:[%s933_s4] sm:$0xff] (!%p211_p2)  ;;  %v281_v8 = vld [vmem:[%s933_s4 + $0x8] sm:$0xff] (!%p211_p2)  ;;  %v835_v26 = vmov (!%p211_p2), 0.0  }
   0x7   : > { %v776_v6 = vpack.c.bf16 (!%p211_p2), %v275_v5, %v274_v4  ;;  %v788_v10 = vpack.c.bf16 (!%p211_p2), %v281_v8, %v280_v7  ;;  %v276_v13 = vld [vmem:[%s932_s3 + $0x20] sm:$0xff] (!%p211_p2)  ;;  %v277_v14 = vld [vmem:[%s932_s3 + $0x28] sm:$0xff] (!%p211_p2)  ;;  %v278_v19 = vld [vmem:[%s932_s3 + $0x30] sm:$0xff] (!%p211_p2)  ;;  %v285_v23 = vand.u32 (!%p211_p2), 127, %v284_v22  ;;  %vm312_vm4 = vcmask (!%p211_p2), 523264  }
   0x8   : > { %773 = vmatprep.subr.bf16.mxu0 (!%p211_p2), %v772_v3  ;;  %v780_v16 = vpack.c.bf16 (!%p211_p2), %v277_v14, %v276_v13  ;;  %v279_v20 = vld [vmem:[%s932_s3 + $0x38] sm:$0xff] (!%p211_p2)  ;;  %vm593_vm9 = vcmask (!%p211_p2), 7168  }
   0x9   : > { %775 = vmatpush3.bf16.msra.mxu0 (!%p211_p2), %v772_v3  ;;  %789 = vmatprep.subr.bf16.mxu1 (!%p211_p2), %v788_v10  ;;  %v784_v21 = vpack.c.bf16 (!%p211_p2), %v279_v20, %v278_v19 }
   0xa   : > { %777 = vmatprep.subr.bf16.mxu0 (!%p211_p2), %v776_v6  ;;  %791 = vmatpush3.bf16.msra.mxu1 (!%p211_p2), %v788_v10 }
   0xb   : > { %793 = vmatprep.subr.bf16.mxu1 (!%p211_p2), %v772_v3 }
   0xd   : > { %s936_s20 = smov (!%p249_p3, %s681_s20), 3  ;;  %779 = vmatpush3.bf16.msra.mxu0 %v776_v6 }
   0xe   : > { %s880_s25 = sshll.u32 %s936_s20, 3  ;;  %781 = vmatprep.subr.bf16.mxu0 %v780_v16 }
   0xf   : > { %s258_s7 = scalar_lea.vmem %s930_s1, %s880_s25  ;;  %s252_s14 = scalar_lea.vmem %s929_s0, %s880_s25 }
  0x10   : > { %v394_v9 = vld [vmem:[%s258_s7] sm:$0xff]  ;;  %s264_s17 = scalar_lea.vmem %s931_s2, %s880_s25  ;;  %v395_v12 = vld [vmem:[%s258_s7 + $0x8] sm:$0xff]  ;;  %s270_s30 = scalar_lea.vmem %s934_s5, %s880_s25 }
  0x11   : > { %397 = vperm.xlu0 %820, %v394_v9   ;;  %v282_v11 = vld [vmem:[%s252_s14] sm:$0xff]  ;;  %v283_v17 = vld [vmem:[%s252_s14 + $0x8] sm:$0xff]  ;;  %783 = vmatpush3.bf16.msra.mxu0 %v780_v16 }
  0x12   : > { %287 = vperm.xlu1 %821, %v282_v11   ;;  %v298_v15 = vld [vmem:[%s264_s17] sm:$0xff]  ;;  %v299_v18 = vld [vmem:[%s264_s17 + $0x8] sm:$0xff]  ;;  %785 = vmatprep.subr.bf16.mxu0 %v784_v21 }
  0x15   : > { %400 = vperm.xlu0 %820, %v395_v12   ;;  %787 = vmatpush3.bf16.msra.mxu0 %v784_v21 }
  0x16   : > { %301 = vperm.xlu1 %821, %v298_v15  }
  0x19   : > { %290 = vperm.xlu0 %820, %v283_v17  }
  0x1a   : > { %304 = vperm.xlu1 %821, %v299_v18  }
  0x90   : > { %v398_v24 = vpop.permute.xlu0 %397 }
  0x91   : > { %vm402_vm1 = vcmp.eq.s32.totalorder %v398_v24, %v285_v23  ;;  %v288_v25 = vpop.permute.xlu1 %287 }
  0x92   : > { %v695_v27 = vsel %vm402_vm1, 1.0, %v835_v26  ;;  %vm292_vm2 = vcmp.eq.s32.totalorder %v288_v25, %v285_v23 }
  0x93   : > { %750 = vmatprep.mubr.msk.f32.mxu1 %vm408_vm0, %v695_v27  ;;  %v689_v30 = vsel %vm292_vm2, 1.0, %v835_v26 }
  0x94   : > { %v401_v28 = vpop.permute.xlu0 %400 }
  0x95   : > { %vm403_vm3 = vcmp.eq.s32.totalorder %v401_v28, %v285_v23  ;;  %v302_v29 = vpop.permute.xlu1 %301 }
  0x96   : > { %v696_v31 = vsel %vm403_vm3, 1.0, %v835_v26  ;;  %vm306_vm5 = vcmp.eq.s32.totalorder %v302_v29, %v285_v23 }
  0x97   : > { %751 = vmatmul.mubr.msk.f32.vlgmr.msra.gmra.mrb[0].mxu1 %vm408_vm0, %v696_v31  ;;  %v691_v32 = vsel %vm306_vm5, 1.0, %v835_v26 }
  0x98   : > { %795 = vmatpush3.bf16.msra.mxu1 %v772_v3  ;;  %743 = vmatprep.mubr.msk.f32.mxu0 %vm312_vm4, %v691_v32  ;;  %v291_v35 = vpop.permute.xlu0 %290 }
  0x99   : > { %797 = vmatprep.subr.bf16.mxu1 %v776_v6  ;;  %v305_v33 = vpop.permute.xlu1 %304  ;;  %769 = vmatprep.mubr.msk.f32.mxu1 %vm312_vm4, %v689_v30  ;;  %vm293_vm7 = vcmp.eq.s32.totalorder %v291_v35, %v285_v23 }
  0x9a   : > { %vm307_vm6 = vcmp.eq.s32.totalorder %v305_v33, %v285_v23  ;;  %v690_v36 = vsel %vm293_vm7, 1.0, %v835_v26 }
  0x9b   : > { %v692_v34 = vsel %vm307_vm6, 1.0, %v835_v26 }
  0x9c   : > { %799 = vmatpush3.bf16.msra.mxu1 %v776_v6  ;;  %744 = vmatmul.mubr.msk.f32.vlgmr.msra.gmra.mrb[0].mxu0 %vm312_vm4, %v692_v34 }
  0x9d   : > { %801 = vmatprep.subr.bf16.mxu1 %v780_v16 }
  0xa0   : > { %803 = vmatpush3.bf16.msra.mxu1 %v780_v16 }
  0xa1   : > { %805 = vmatprep.subr.bf16.mxu1 %v784_v21 }
  0xa4   : > { %807 = vmatpush3.bf16.msra.mxu1 %v784_v21 }
  0xa7   : > { %770 = vmatmul.mubr.msk.f32.vlgmr.msra.gmra.mrb[0].mxu1 %vm312_vm4, %v690_v36 }
 0x16f   : > { %v745_v37 = vpop.f32.mrb[0].mxu0 }
 0x170   : > { %v385_v38 = vpop.f32.mrb[1].mxu0 }
 0x17a   : > { %v771_v39 = vpop.f32.mrb[0].mxu1 }
 0x17b   : > { %v572_v40 = vsub.f32 %v771_v39, %v745_v37  ;;  %v562_v41 = vpop.f32.mrb[1].mxu1 }
 0x17c   : > { %v571_v42 = vsub.f32 %v562_v41, %v385_v38 }
 0x17d   : > { %v574_v43 = vmul.f32 %v572_v40, %v572_v40 }
 0x17e   : > { %v573_v44 = vmul.f32 %v571_v42, %v571_v42 }
 0x17f   : > { %577 = vadd.xlane.f32.xlu1 %v574_v43 }
 0x180   : > { %575 = vadd.xlane.f32.xlu0 %v573_v44 }
 0x20c   : > { %v578_v45 = vpop.xlane.xlu1 %577 }
 0x20d   : > { %822 = vrsqrt.f32 %v578_v45  ;;  %v576_v46 = vpop.xlane.xlu0 %575  ;;  %vm588_vm8 = vcmp.eq.f32.partialorder %v578_v45, inf  ;;  %v591_v53 = vand.u32 2147483648, %v578_v45  ;;  %vm590_vm12 = vcmp.eq.f32.partialorder %v578_v45, 0.0 }
 0x20e   : > { %824 = vrsqrt.f32 %v576_v46  ;;  %vm581_vm10 = vcmp.eq.f32.partialorder %v576_v46, inf  ;;  %v584_v52 = vand.u32 2147483648, %v576_v46  ;;  %vm583_vm11 = vcmp.eq.f32.partialorder %v576_v46, 0.0 }
 0x217   : > { %v823_v47 = vpop.eup %822 }
 0x218   : > { %v825_v48 = vpop.eup %824  ;;  %v587_v49 = vmul.f32 %v823_v47, %v578_v45 }
 0x219   : > { %v580_v50 = vmul.f32 %v825_v48, %v576_v46 }
 0x21a   : > { %v589_v51 = vsel %vm588_vm8, %v578_v45, %v587_v49 }
 0x21b   : > { %v582_v54 = vsel %vm581_vm10, %v576_v46, %v580_v50  ;;  %v592_v56 = vsel %vm590_vm12, %v591_v53, %v589_v51 }
 0x21c   : > { %v585_v55 = vsel %vm583_vm11, %v584_v52, %v582_v54  ;;  %595 = vst.msk [vmem:[%s270_s30 + $0x8] sm:$0xff] %vm593_vm9, %v592_v56 }
 0x21d   : > { %594 = vst.msk [vmem:[%s270_s30] sm:$0xff] %vm593_vm9, %v585_v55 }
 0x21e PF: > { %s15_s18 = sadd.s32 1, %s832_s18  }
 0x21f   : > { %p12_p4 = scmp.ge.s32.totalorder %s15_s18, 4  }
 0x221   :  { %14 = sbr.rel (!%p12_p4) target bundleno = 1 (0x1), region = 76 }

</bundles_post_ra>
